<compile_context>
chip_gen: v5e
topology: v5e:2x2
jax: 0.10.0
libtpu: 0.0.40
codegen_flags: <defaults>
</compile_context>

<pallas_src>
import functools

import jax
import jax.numpy as jnp
from jax.experimental import pallas as pl
from jax.experimental.pallas import tpu as pltpu

C = 32            # channels (must be >= r so the bottleneck is non-empty)
R = 16            # reduction ratio
HID = C // R      # bottleneck width of the channel MLP
KSIZE = 7         # spatial-attention conv kernel size
PAD = KSIZE // 2


def cbam_kernel(x_ref, w1b_ref, w2b_ref, wm_ref, wx_ref, o_ref, *, bt, c, hw):
    # x_ref  : VMEM (bt*C, HW)       one tile of batch elements, lane-dense
    # w1b_ref: VMEM (bt*HID, bt*C)   kron(I_bt, W1)  -- block-diagonal MLP weight
    # w2b_ref: VMEM (bt*C, bt*HID)   kron(I_bt, W2)
    # wm_ref : VMEM (HW, HW)         conv operator for the channel-mean map
    # wx_ref : VMEM (HW, HW)         conv operator for the channel-max map
    x = x_ref[...].astype(jnp.float32)                              # (bt*C, HW)

    # ---------------- channel attention ----------------
    mean_c = jnp.sum(x, axis=-1, keepdims=True) * (1.0 / hw)        # (bt*C, 1)
    max_c = jnp.max(x, axis=-1, keepdims=True)                      # (bt*C, 1)
    stats = jnp.concatenate([mean_c, max_c], axis=-1)               # (bt*C, 2)

    # One matmul pair for ALL bt elements (block-diagonal weights), both the
    # mean and max columns at once.
    hdn = jnp.maximum(
        jnp.dot(w1b_ref[...], stats, preferred_element_type=jnp.float32), 0.0)  # (bt*HID, 2)
    out2 = jnp.dot(w2b_ref[...], hdn, preferred_element_type=jnp.float32)        # (bt*C, 2)
    ca = jax.nn.sigmoid(out2[:, 0:1] + out2[:, 1:2])                             # (bt*C, 1)

    xs = x * ca                                                     # lane broadcast

    # ---------------- spatial attention ----------------
    # Per-element channel mean / max (cross-sublane reduce of a (C, HW) slab),
    # stacked into (bt, HW) maps so the conv runs as one batched MXU pass.
    mean_rows, max_rows = [], []
    for b in range(bt):
        blk = xs[b * c:(b + 1) * c, :]                              # (C, HW)
        mean_rows.append(jnp.mean(blk, axis=0, keepdims=True))      # (1, HW)
        max_rows.append(jnp.max(blk, axis=0, keepdims=True))        # (1, HW)
    mean_sp = mean_rows[0] if bt == 1 else jnp.concatenate(mean_rows, axis=0)   # (bt, HW)
    max_sp = max_rows[0] if bt == 1 else jnp.concatenate(max_rows, axis=0)      # (bt, HW)

    # 7x7 conv with zero padding == two (bt,HW)x(HW,HW) matmuls on the MXU.
    conv = (jnp.dot(mean_sp, wm_ref[...], preferred_element_type=jnp.float32) +
            jnp.dot(max_sp, wx_ref[...], preferred_element_type=jnp.float32))   # (bt, HW)
    sa = jax.nn.sigmoid(conv)                                        # (bt, HW)

    # Dense (C, HW) store per element (rows aligned to a multiple of 8).
    for b in range(bt):
        o_ref[pl.ds(b * c, c), :] = (
            xs[b * c:(b + 1) * c, :] * sa[b:b + 1, :]).astype(o_ref.dtype)


def _build_conv_operators(wk, h, w):
    """(Wm, Wx): (HW, HW) matrices such that conv2d([mean,max], wk, pad=3)
    == mean_flat @ Wm + max_flat @ Wx, boundary zero-padding baked in."""
    hw = h * w
    k = wk.shape[-1]
    pad = k // 2
    p = jnp.arange(hw)
    pi = p // w
    pj = p % w
    kk = jnp.arange(k)
    ri = pi[:, None, None] + kk[None, :, None] - pad                 # (hw, k, 1)
    cj = pj[:, None, None] + kk[None, None, :] - pad                 # (hw, 1, k)
    valid = (ri >= 0) & (ri < h) & (cj >= 0) & (cj < w)              # (hw, k, k)
    q = jnp.where(valid, ri * w + cj, 0)                             # (hw, k, k)
    onehot = jax.nn.one_hot(q.reshape(hw, k * k), hw, dtype=jnp.float32)
    onehot = onehot * valid.reshape(hw, k * k).astype(jnp.float32)[..., None]   # (p, tap, q)
    wk_f = wk.astype(jnp.float32).reshape(2, k * k)                  # (2, taps)
    mats = jnp.einsum('ct,ptq->cqp', wk_f, onehot)                   # (2, hw_q, hw_p)
    return mats[0], mats[1]


def cbam(x, w1, w2, wk, batch_tile=None):
    b, c, h, w = x.shape
    hw = h * w
    hid = w1.shape[0]
    bt = min(b, 8) if batch_tile is None else max(1, min(batch_tile, b))
    b_pad = ((b + bt - 1) // bt) * bt

    x2 = x.reshape(b, c, hw)
    if b_pad != b:
        x2 = jnp.concatenate([x2, jnp.zeros((b_pad - b, c, hw), x.dtype)], axis=0)
    x2 = x2.reshape(b_pad * c, hw)                                   # lane-dense layout

    eye = jnp.eye(bt, dtype=jnp.float32)
    w1b = jnp.kron(eye, w1.astype(jnp.float32))                      # (bt*hid, bt*c)
    w2b = jnp.kron(eye, w2.astype(jnp.float32))                      # (bt*c, bt*hid)
    wm, wx = _build_conv_operators(wk, h, w)                         # (hw, hw) each

    kernel = functools.partial(cbam_kernel, bt=bt, c=c, hw=hw)
    out = pl.pallas_call(
        kernel,
        out_shape=jax.ShapeDtypeStruct((b_pad * c, hw), x.dtype),
        grid=(b_pad // bt,),
        in_specs=[
            pl.BlockSpec((bt * c, hw), lambda i: (i, 0)),            # x, one batch tile/step
            pl.BlockSpec((bt * hid, bt * c), lambda i: (0, 0)),      # block-diag W1 (resident)
            pl.BlockSpec((bt * c, bt * hid), lambda i: (0, 0)),      # block-diag W2 (resident)
            pl.BlockSpec((hw, hw), lambda i: (0, 0)),                # conv operator (mean)
            pl.BlockSpec((hw, hw), lambda i: (0, 0)),                # conv operator (max)
        ],
        out_specs=pl.BlockSpec((bt * c, hw), lambda i: (i, 0)),
        compiler_params=pltpu.CompilerParams(dimension_semantics=("parallel",)),
    )(x2, w1b, w2b, wm, wx)
    return out.reshape(b_pad, c, h, w)[:b]


def cbam_ref(x, w1, w2, wk):
    """Pure-JAX reference mirroring the PyTorch forward."""
    def mlp(v):                                                      # v: (B, C)
        return jnp.maximum(v @ w1.T, 0.0) @ w2.T
    mean_c = x.mean(axis=(2, 3))
    max_c = x.max(axis=(2, 3))
    ca = jax.nn.sigmoid(mlp(mean_c) + mlp(max_c))[:, :, None, None]
    xs = x * ca
    sp = jnp.concatenate(
        [xs.mean(axis=1, keepdims=True), xs.max(axis=1, keepdims=True)], axis=1)
    conv = jax.lax.conv_general_dilated(
        sp, wk, window_strides=(1, 1), padding=[(PAD, PAD), (PAD, PAD)],
        dimension_numbers=("NCHW", "OIHW", "NCHW"))
    return xs * jax.nn.sigmoid(conv)


if __name__ == "__main__":
    B, H, W = 2, 16, 16
    key = jax.random.PRNGKey(0)
    kx, k1, k2, kc = jax.random.split(key, 4)

    x = jax.random.normal(kx, (B, C, H, W), jnp.float32)
    # Deterministic synthetic parameters (shapes from the module's __init__):
    w1 = jax.random.normal(k1, (HID, C), jnp.float32) * 0.1          # Linear(c, c//r, bias=False)
    w2 = jax.random.normal(k2, (C, HID), jnp.float32) * 0.1          # Linear(c//r, c, bias=False)
    wk = jax.random.normal(kc, (1, 2, KSIZE, KSIZE), jnp.float32) * 0.1  # Conv2d(2,1,7,pad=3,bias=False)

    out = jax.block_until_ready(cbam(x, w1, w2, wk))
    ref = cbam_ref(x, w1, w2, wk)

    assert out.shape == x.shape
    assert jnp.allclose(out, ref, atol=1e-4, rtol=1e-4), float(jnp.max(jnp.abs(out - ref)))
    print("KERNEL_OK")
</pallas_src>

<mosaic_0001>
module attributes {stable_mosaic.version = 11 : i64} {
  func.func @cbam_kernel(%arg0: i32, %arg1: memref<64x256xf32, #tpu.memory_space<vmem>>, %arg2: memref<4x64xf32, #tpu.memory_space<vmem>>, %arg3: memref<64x4xf32, #tpu.memory_space<vmem>>, %arg4: memref<256x256xf32, #tpu.memory_space<vmem>>, %arg5: memref<256x256xf32, #tpu.memory_space<vmem>>, %arg6: memref<64x256xf32, #tpu.memory_space<vmem>>) attributes {dimension_semantics = [#tpu.dimension_semantics<parallel>], iteration_bounds = array<i64: 1>, scalar_prefetch = 0 : i64, scratch_operands = 0 : i64, tpu.core_type = #tpu.core_type<tc>, window_params = [{transform_indices = @transform_0, window_bounds = array<i64: 64, 256>}, {pipeline_mode = #tpu.pipeline_mode<synchronous>, transform_indices = @transform_1, window_bounds = array<i64: 4, 64>}, {pipeline_mode = #tpu.pipeline_mode<synchronous>, transform_indices = @transform_2, window_bounds = array<i64: 64, 4>}, {pipeline_mode = #tpu.pipeline_mode<synchronous>, transform_indices = @transform_3, window_bounds = array<i64: 256, 256>}, {pipeline_mode = #tpu.pipeline_mode<synchronous>, transform_indices = @transform_4, window_bounds = array<i64: 256, 256>}, {transform_indices = @transform_5, window_bounds = array<i64: 64, 256>}]} {
    %c0 = arith.constant 0 : index
    %c0_0 = arith.constant 0 : index
    %0 = vector.load %arg1[%c0, %c0_0] : memref<64x256xf32, #tpu.memory_space<vmem>>, vector<64x256xf32>
    %cst = arith.constant dense<0.000000e+00> : vector<64xf32>
    %1 = vector.multi_reduction <add>, %0, %cst [1] : vector<64x256xf32> to vector<64xf32>
    %2 = vector.shape_cast %1 : vector<64xf32> to vector<64x1xf32>
    %cst_1 = arith.constant 3.906250e-03 : f32
    %3 = vector.broadcast %cst_1 : f32 to vector<64x1xf32>
    %4 = arith.mulf %2, %3 : vector<64x1xf32>
    %cst_2 = arith.constant dense<0xFF800000> : vector<64xf32>
    %5 = vector.multi_reduction <maximumf>, %0, %cst_2 [1] : vector<64x256xf32> to vector<64xf32>
    %6 = vector.shape_cast %5 : vector<64xf32> to vector<64x1xf32>
    %7 = tpu.concatenate %4, %6 in 1 : vector<64x1xf32>, vector<64x1xf32> -> vector<64x2xf32>
    %c0_3 = arith.constant 0 : index
    %c0_4 = arith.constant 0 : index
    %8 = vector.load %arg2[%c0_3, %c0_4] : memref<4x64xf32, #tpu.memory_space<vmem>>, vector<4x64xf32>
    %cst_5 = arith.constant dense<0.000000e+00> : vector<4x2xf32>
    %9 = tpu.matmul %8, %7, %cst_5 {dimension_numbers = #tpu.dot_dimension_numbers<[1], [0], [0], [1], [0, 0, 1, 1], [], []>} : vector<4x64xf32>, vector<64x2xf32>, vector<4x2xf32> -> vector<4x2xf32>
    %cst_6 = arith.constant 0.000000e+00 : f32
    %10 = vector.broadcast %cst_6 : f32 to vector<4x2xf32>
    %11 = arith.maximumf %9, %10 : vector<4x2xf32>
    %c0_7 = arith.constant 0 : index
    %c0_8 = arith.constant 0 : index
    %12 = vector.load %arg3[%c0_7, %c0_8] : memref<64x4xf32, #tpu.memory_space<vmem>>, vector<64x4xf32>
    %cst_9 = arith.constant dense<0.000000e+00> : vector<64x2xf32>
    %13 = tpu.matmul %12, %11, %cst_9 {dimension_numbers = #tpu.dot_dimension_numbers<[1], [0], [0], [1], [0, 0, 1, 1], [], []>} : vector<64x4xf32>, vector<4x2xf32>, vector<64x2xf32> -> vector<64x2xf32>
    %14 = vector.extract_strided_slice %13 {offsets = [0, 0], sizes = [64, 1], strides = [1, 1]} : vector<64x2xf32> to vector<64x1xf32>
    %15 = vector.extract_strided_slice %13 {offsets = [0, 1], sizes = [64, 1], strides = [1, 1]} : vector<64x2xf32> to vector<64x1xf32>
    %16 = arith.addf %14, %15 : vector<64x1xf32>
    %17 = arith.negf %16 : vector<64x1xf32>
    %18 = math.exp %17 : vector<64x1xf32>
    %cst_10 = arith.constant 1.000000e+00 : f32
    %19 = vector.broadcast %cst_10 : f32 to vector<64x1xf32>
    %20 = arith.addf %19, %18 : vector<64x1xf32>
    %21 = arith.divf %19, %20 : vector<64x1xf32>
    %22 = vector.broadcast %21 : vector<64x1xf32> to vector<64x256xf32>
    %23 = arith.mulf %0, %22 : vector<64x256xf32>
    %24 = vector.extract_strided_slice %23 {offsets = [0, 0], sizes = [32, 256], strides = [1, 1]} : vector<64x256xf32> to vector<32x256xf32>
    %cst_11 = arith.constant dense<0.000000e+00> : vector<256xf32>
    %25 = vector.multi_reduction <add>, %24, %cst_11 [0] : vector<32x256xf32> to vector<256xf32>
    %26 = vector.shape_cast %25 : vector<256xf32> to vector<1x256xf32>
    %cst_12 = arith.constant 3.200000e+01 : f32
    %27 = vector.broadcast %cst_12 : f32 to vector<1x256xf32>
    %28 = arith.divf %26, %27 : vector<1x256xf32>
    %cst_13 = arith.constant dense<0xFF800000> : vector<256xf32>
    %29 = vector.multi_reduction <maximumf>, %24, %cst_13 [0] : vector<32x256xf32> to vector<256xf32>
    %30 = vector.shape_cast %29 : vector<256xf32> to vector<1x256xf32>
    %31 = vector.extract_strided_slice %23 {offsets = [32, 0], sizes = [32, 256], strides = [1, 1]} : vector<64x256xf32> to vector<32x256xf32>
    %cst_14 = arith.constant dense<0.000000e+00> : vector<256xf32>
    %32 = vector.multi_reduction <add>, %31, %cst_14 [0] : vector<32x256xf32> to vector<256xf32>
    %33 = vector.shape_cast %32 : vector<256xf32> to vector<1x256xf32>
    %cst_15 = arith.constant 3.200000e+01 : f32
    %34 = vector.broadcast %cst_15 : f32 to vector<1x256xf32>
    %35 = arith.divf %33, %34 : vector<1x256xf32>
    %cst_16 = arith.constant dense<0xFF800000> : vector<256xf32>
    %36 = vector.multi_reduction <maximumf>, %31, %cst_16 [0] : vector<32x256xf32> to vector<256xf32>
    %37 = vector.shape_cast %36 : vector<256xf32> to vector<1x256xf32>
    %38 = tpu.concatenate %28, %35 in 0 : vector<1x256xf32>, vector<1x256xf32> -> vector<2x256xf32>
    %39 = tpu.concatenate %30, %37 in 0 : vector<1x256xf32>, vector<1x256xf32> -> vector<2x256xf32>
    %c0_17 = arith.constant 0 : index
    %c0_18 = arith.constant 0 : index
    %40 = vector.load %arg4[%c0_17, %c0_18] : memref<256x256xf32, #tpu.memory_space<vmem>>, vector<256x256xf32>
    %cst_19 = arith.constant dense<0.000000e+00> : vector<2x256xf32>
    %41 = tpu.matmul %38, %40, %cst_19 {dimension_numbers = #tpu.dot_dimension_numbers<[1], [0], [0], [1], [0, 0, 1, 1], [], []>} : vector<2x256xf32>, vector<256x256xf32>, vector<2x256xf32> -> vector<2x256xf32>
    %c0_20 = arith.constant 0 : index
    %c0_21 = arith.constant 0 : index
    %42 = vector.load %arg5[%c0_20, %c0_21] : memref<256x256xf32, #tpu.memory_space<vmem>>, vector<256x256xf32>
    %cst_22 = arith.constant dense<0.000000e+00> : vector<2x256xf32>
    %43 = tpu.matmul %39, %42, %cst_22 {dimension_numbers = #tpu.dot_dimension_numbers<[1], [0], [0], [1], [0, 0, 1, 1], [], []>} : vector<2x256xf32>, vector<256x256xf32>, vector<2x256xf32> -> vector<2x256xf32>
    %44 = arith.addf %41, %43 : vector<2x256xf32>
    %45 = arith.negf %44 : vector<2x256xf32>
    %46 = math.exp %45 : vector<2x256xf32>
    %cst_23 = arith.constant 1.000000e+00 : f32
    %47 = vector.broadcast %cst_23 : f32 to vector<2x256xf32>
    %48 = arith.addf %47, %46 : vector<2x256xf32>
    %49 = arith.divf %47, %48 : vector<2x256xf32>
    %50 = vector.extract_strided_slice %23 {offsets = [0, 0], sizes = [32, 256], strides = [1, 1]} : vector<64x256xf32> to vector<32x256xf32>
    %51 = vector.extract_strided_slice %49 {offsets = [0, 0], sizes = [1, 256], strides = [1, 1]} : vector<2x256xf32> to vector<1x256xf32>
    %52 = vector.broadcast %51 : vector<1x256xf32> to vector<32x256xf32>
    %53 = arith.mulf %50, %52 : vector<32x256xf32>
    %c0_24 = arith.constant 0 : index
    %c0_25 = arith.constant 0 : index
    %54 = vector.load %arg6[%c0_24, %c0_25] : memref<64x256xf32, #tpu.memory_space<vmem>>, vector<32x256xf32>
    tpu.vector_store %arg6[%c0_24, %c0_25], %53 {strides = array<i32>} : memref<64x256xf32, #tpu.memory_space<vmem>>, vector<32x256xf32>,
    %55 = vector.extract_strided_slice %23 {offsets = [32, 0], sizes = [32, 256], strides = [1, 1]} : vector<64x256xf32> to vector<32x256xf32>
    %56 = vector.extract_strided_slice %49 {offsets = [1, 0], sizes = [1, 256], strides = [1, 1]} : vector<2x256xf32> to vector<1x256xf32>
    %57 = vector.broadcast %56 : vector<1x256xf32> to vector<32x256xf32>
    %58 = arith.mulf %55, %57 : vector<32x256xf32>
    %c32 = arith.constant 32 : index
    %c0_26 = arith.constant 0 : index
    %59 = vector.load %arg6[%c32, %c0_26] : memref<64x256xf32, #tpu.memory_space<vmem>>, vector<32x256xf32>
    tpu.vector_store %arg6[%c32, %c0_26], %58 {strides = array<i32>} : memref<64x256xf32, #tpu.memory_space<vmem>>, vector<32x256xf32>,
    return
  }
  func.func @transform_0(%arg0: i32) -> (i32, i32) {
    %c0_i32 = arith.constant 0 : i32
    %c0_i32_0 = arith.constant 0 : i32
    return %arg0, %c0_i32 : i32, i32
  }
  func.func @transform_1(%arg0: i32) -> (i32, i32) {
    %c0_i32 = arith.constant 0 : i32
    %c0_i32_0 = arith.constant 0 : i32
    %c0_i32_1 = arith.constant 0 : i32
    return %c0_i32, %c0_i32_0 : i32, i32
  }
  func.func @transform_2(%arg0: i32) -> (i32, i32) {
    %c0_i32 = arith.constant 0 : i32
    %c0_i32_0 = arith.constant 0 : i32
    %c0_i32_1 = arith.constant 0 : i32
    return %c0_i32, %c0_i32_0 : i32, i32
  }
  func.func @transform_3(%arg0: i32) -> (i32, i32) {
    %c0_i32 = arith.constant 0 : i32
    %c0_i32_0 = arith.constant 0 : i32
    %c0_i32_1 = arith.constant 0 : i32
    return %c0_i32, %c0_i32_0 : i32, i32
  }
  func.func @transform_4(%arg0: i32) -> (i32, i32) {
    %c0_i32 = arith.constant 0 : i32
    %c0_i32_0 = arith.constant 0 : i32
    %c0_i32_1 = arith.constant 0 : i32
    return %c0_i32, %c0_i32_0 : i32, i32
  }
  func.func @transform_5(%arg0: i32) -> (i32, i32) {
    %c0_i32 = arith.constant 0 : i32
    %c0_i32_0 = arith.constant 0 : i32
    return %arg0, %c0_i32 : i32, i32
  }
}

</mosaic_0001>

<bundles_post_ra>
// kernel: tpu_custom_call.1
= control target key start
LH: loop header
LB: loop body
LE: loop exit
PB: predicated region body
PF: predicated region fallthrough
CT: control target
= control target key end

     0   :  { %10 = vsyncpa [#allocation3], 0  ;;  %s1404_s0 = inlined_call_operand.hbm [shape: f32[64,256], index: 0, kind: input, shape index: {}]   ;;  %s1405_s1 = inlined_call_operand.vmem [shape: f32[4,64], index: 1, kind: input, shape index: {}]   ;;  %s1406_s2 = inlined_call_operand.vmem [shape: f32[64,4], index: 2, kind: input, shape index: {}]   ;;  %s1407_s3 = inlined_call_operand.hbm [shape: f32[256,256], index: 3, kind: input, shape index: {}]   ;;  %s1408_s4 = inlined_call_operand.hbm [shape: f32[256,256], index: 4, kind: input, shape index: {}]   ;;  %s1409_s5 = inlined_call_operand.hbm [shape: f32[64,256], index: 5, kind: output, shape index: {}]  }
   0x1   :  { %11 = vsyncpa [#allocation6], 0 }
   0x2   :  { %12 = vsyncpa [#allocation4], 0  ;;  %s34_s20 = sshll.u32 %s1407_s3, 4  ;;  %s1155_s21 = smov [#allocation5]   ;;  %s35_s20 = int_to_ptr.hbm [resolvable:$true] %s34_s20 }
   0x3   :  { %s36_s22 = sshll.u32 %s1155_s21, 4  ;;  %s17_s25 = sshll.u32 %s1404_s0, 4  ;;  %s37_s22 = int_to_ptr.vmem [resolvable:$true] %s36_s22  ;;  %s18_s25 = int_to_ptr.hbm [resolvable:$true] %s17_s25 }
   0x4   :  { %s1156_s26 = smov 256   ;;  %s1157_s27 = smov 16  }
   0x5   :  { %42 = dma.hbm_to_vmem [thread:$0]  %s35_s20, 8192, %s37_s22, [#allocation6], %s1156_s26, %s1156_s26, %s1157_s27  }
   0x6   :  { %s1158_s28 = smov [#allocation2]   ;;  %s47_s3 = sshll.u32 %s1408_s4, 4  ;;  %s48_s3 = int_to_ptr.hbm [resolvable:$true] %s47_s3 }
   0x7   :  { %s19_s29 = sshll.u32 %s1158_s28, 4  ;;  %s1159_s0 = smov [#allocation7]   ;;  %s20_s29 = int_to_ptr.vmem [resolvable:$true] %s19_s29 }
   0x8   :  { %25 = dma.hbm_to_vmem [thread:$0]  %s18_s25, 2048, %s20_s29, [#allocation3], %s1156_s26, %s1156_s26, %s1157_s27  }
   0x9   :  { %s49_s7 = sshll.u32 %s1159_s0, 4  ;;  %s50_s7 = int_to_ptr.vmem [resolvable:$true] %s49_s7 }
   0xa   :  { %55 = dma.hbm_to_vmem [thread:$0]  %s48_s3, 8192, %s50_s7, [#allocation6], %s1156_s26, %s1156_s26, %s1157_s27  }
   0xb   :  { %1149 = dma.done.wait [#allocation3], 2048  }
   0xc   :  { %1150 = vsyncadd [#allocation3], 4294965248 }
   0xd   :  { %1151 = dma.done.wait [#allocation6], 16384  }
   0xe   :  { %1152 = vsyncadd [#allocation6], 4294950912  ;;  %v82_v0 = vld [vmem:[#allocation2 + $0x70] sm:$0xff]  ;;  %v83_v1 = vld [vmem:[#allocation2 + $0x78] sm:$0xff]  ;;  %vm140_vm0 = vcmask 7168   ;;  %vm150_vm1 = vcmask 523264  }
   0xf   :  { %v80_v2 = vld [vmem:[#allocation2 + $0x60] sm:$0xff]  ;;  %v137_v3 = vmax.f32 %v82_v0, %v83_v1  ;;  %v105_v4 = vadd.f32 %v83_v1, %v82_v0  ;;  %v81_v5 = vld [vmem:[#allocation2 + $0x68] sm:$0xff]  ;;  %v78_v7 = vld [vmem:[#allocation2 + $0x50] sm:$0xff]  ;;  %vm208_vm2 = vcmask 1043456   ;;  %vm183_vm3 = vcmask 31744   ;;  %s1160_s24 = smov 127  }
  0x10   :  { %v134_v6 = vmax.f32 %v80_v2, %v81_v5  ;;  %v79_v8 = vld [vmem:[#allocation2 + $0x58] sm:$0xff]  ;;  %v76_v9 = vld [vmem:[#allocation2 + $0x40] sm:$0xff]  ;;  %v77_v10 = vld [vmem:[#allocation2 + $0x48] sm:$0xff]  ;;  %v102_v11 = vadd.f32 %v81_v5, %v80_v2  ;;  %s957_s30 = sshll.u32 %s1409_s5, 4  ;;  %s958_s30 = int_to_ptr.hbm [resolvable:$true] %s957_s30 }
  0x11   :  { %138 = vmax.xlane.f32.xlu1 %v137_v3  ;;  %106 = vadd.xlane.f32.xlu0 %v105_v4  ;;  %v99_v12 = vadd.f32 %v79_v8, %v78_v7  ;;  %v96_v13 = vadd.f32 %v77_v10, %v76_v9  ;;  %v1212_v14 = vld [vmem:[#allocation2 + $0x30] sm:$0xff]  ;;  %v1214_v15 = vld [vmem:[#allocation2 + $0x38] sm:$0xff]  ;;  %v131_v16 = vmax.f32 %v78_v7, %v79_v8  ;;  %v1218_v19 = vld [vmem:[#allocation2 + $0x20] sm:$0xff] }
  0x12   :  { %135 = vmax.xlane.f32.xlu2 %v134_v6  ;;  %v93_v17 = vadd.f32 %v1214_v15, %v1212_v14  ;;  %v128_v18 = vmax.f32 %v76_v9, %v77_v10  ;;  %v1220_v20 = vld [vmem:[#allocation2 + $0x28] sm:$0xff]  ;;  %v1222_v21 = vld [vmem:[#allocation2 + $0x10] sm:$0xff]  ;;  %v1224_v22 = vld [vmem:[#allocation2 + $0x18] sm:$0xff]  ;;  %v125_v23 = vmax.f32 %v1212_v14, %v1214_v15 }
  0x13   :  { %v90_v24 = vadd.f32 %v1220_v20, %v1218_v19  ;;  %v87_v25 = vadd.f32 %v1224_v22, %v1222_v21  ;;  %v1232_v26 = vld [vmem:[#allocation2] sm:$0xff]  ;;  %v1234_v27 = vld [vmem:[#allocation2 + $0x8] sm:$0xff]  ;;  %v122_v28 = vmax.f32 %v1218_v19, %v1220_v20  ;;  %v119_v30 = vmax.f32 %v1222_v21, %v1224_v22  ;;  %v177_v5 = vld [vmem:[%s1406_s2 + $0x10] sm:$0xff] }
  0x14   :  { %v84_v29 = vadd.f32 %v1234_v27, %v1232_v26  ;;  %v116_v31 = vmax.f32 %v1232_v26, %v1234_v27  ;;  %v149_v63 = vld [vmem:[%s1405_s1] sm:$0xf]  ;;  %v176_v4 = vld [vmem:[%s1406_s2 + $0x8] sm:$0xff]  ;;  %v178_v6 = vld [vmem:[%s1406_s2 + $0x18] sm:$0xff] }
  0x15   :  { %v175_v3 = vld [vmem:[%s1406_s2] sm:$0xff]  ;;  %v180_v8 = vld [vmem:[%s1406_s2 + $0x28] sm:$0xff]  ;;  %v181_v9 = vld [vmem:[%s1406_s2 + $0x30] sm:$0xff] }
  0x16   :  { %v179_v7 = vld [vmem:[%s1406_s2 + $0x20] sm:$0xff]  ;;  %v182_v10 = vld [vmem:[%s1406_s2 + $0x38] sm:$0xff]  ;;  %s1163_s2 = smov [#allocation8]  }
  0x17   :  { %s955_s25 = sshll.u32 %s1163_s2, 4  ;;  %s956_s25 = int_to_ptr.vmem [resolvable:$true] %s955_s25 }
  0x19   :  { %103 = vadd.xlane.f32.xlu0 %v102_v11  ;;  %100 = vadd.xlane.f32.xlu1 %v99_v12 }
  0x1a   :  { %97 = vadd.xlane.f32.xlu2 %v96_v13 }
  0x21   :  { %132 = vmax.xlane.f32.xlu0 %v131_v16  ;;  %94 = vadd.xlane.f32.xlu1 %v93_v17 }
  0x22   :  { %129 = vmax.xlane.f32.xlu2 %v128_v18 }
  0x29   :  { %126 = vmax.xlane.f32.xlu1 %v125_v23  ;;  %91 = vadd.xlane.f32.xlu0 %v90_v24 }
  0x2a   :  { %88 = vadd.xlane.f32.xlu2 %v87_v25  ;;  %v1161_v25 = vmov 0  }
  0x2b   :  { %1001 = vset.pattern.permute.xlu2 %v1161_v25  ;;  %1000 = vset.pattern.permute.xlu0 %v1161_v25 }
  0x2c   :  { %1002 = vset.pattern.permute.xlu1 %v1161_v25 }
  0x31   :  { %123 = vmax.xlane.f32.xlu0 %v122_v28  ;;  %85 = vadd.xlane.f32.xlu1 %v84_v29 }
  0x32   :  { %120 = vmax.xlane.f32.xlu2 %v119_v30 }
  0x39   :  { %117 = vmax.xlane.f32.xlu0 %v116_v31 }
  0x84   :  { %v139_v32 = vpop.xlane.xlu1 %138  ;;  %v107_v33 = vpop.xlane.xlu0 %106 }
  0x85   :  { %v115_v34 = vmul.f32 0.00390625, %v107_v33  ;;  %v136_v35 = vpop.xlane.xlu2 %135 }
  0x87   :  { %v148_v36 = vsel %vm140_vm0, %v115_v34, %v139_v32 }
  0x88   :  { %162 = vmatpush.msra.mxu0 %v148_v36 }
  0x8c   :  { %v104_v37 = vpop.xlane.xlu0 %103  ;;  %v101_v38 = vpop.xlane.xlu1 %100 }
  0x8d   :  { %v114_v39 = vmul.f32 0.00390625, %v104_v37  ;;  %v98_v40 = vpop.xlane.xlu2 %97  ;;  %v113_v42 = vmul.f32 0.00390625, %v101_v38 }
  0x8e   :  { %v112_v43 = vmul.f32 0.00390625, %v98_v40 }
  0x8f   :  { %v147_v41 = vsel %vm140_vm0, %v114_v39, %v136_v35 }
  0x90   :  { %163 = vmatpush.msra.mxu0 %v147_v41 }
  0x94   :  { %v133_v44 = vpop.xlane.xlu0 %132  ;;  %v95_v45 = vpop.xlane.xlu1 %94 }
  0x95   :  { %v130_v46 = vpop.xlane.xlu2 %129  ;;  %v146_v47 = vsel %vm140_vm0, %v113_v42, %v133_v44  ;;  %v111_v49 = vmul.f32 0.00390625, %v95_v45 }
  0x96   :  { %164 = vmatpush.msra.mxu0 %v146_v47  ;;  %v145_v48 = vsel %vm140_vm0, %v112_v43, %v130_v46 }
  0x98   :  { %165 = vmatpush.msra.mxu0 %v145_v48 }
  0x9c   :  { %v127_v50 = vpop.xlane.xlu1 %126  ;;  %v92_v51 = vpop.xlane.xlu0 %91 }
  0x9d   :  { %v89_v52 = vpop.xlane.xlu2 %88  ;;  %v144_v53 = vsel %vm140_vm0, %v111_v49, %v127_v50  ;;  %v110_v54 = vmul.f32 0.00390625, %v92_v51 }
  0x9e   :  { %166 = vmatpush.msra.mxu0 %v144_v53  ;;  %v109_v55 = vmul.f32 0.00390625, %v89_v52 }
  0xa4   :  { %v124_v56 = vpop.xlane.xlu0 %123  ;;  %v86_v59 = vpop.xlane.xlu1 %85 }
  0xa5   :  { %v121_v57 = vpop.xlane.xlu2 %120  ;;  %v143_v58 = vsel %vm140_vm0, %v110_v54, %v124_v56  ;;  %v108_v61 = vmul.f32 0.00390625, %v86_v59 }
  0xa6   :  { %167 = vmatpush.msra.mxu0 %v143_v58  ;;  %v142_v60 = vsel %vm140_vm0, %v109_v55, %v121_v57 }
  0xa8   :  { %168 = vmatpush.msra.mxu0 %v142_v60 }
  0xac   :  { %v118_v62 = vpop.xlane.xlu0 %117 }
  0xad   :  { %v141_v0 = vsel %vm140_vm0, %v108_v61, %v118_v62 }
  0xae   :  { %169 = vmatpush.msra.mxu0 %v141_v0 }
  0xaf   :  { %971 = vmatmul.msk.f32.vlgmr.msra.gmra.mxu0 %vm150_vm1, %v149_v63 }
 0x12c   :  { %v171_v1 = vpop.f32.mrf.mxu0 }
 0x12d   :  { %v174_v2 = vmax.f32 %v171_v1, 0.0 }
 0x12f   :  { %972 = vmatpush.msk.msra.mxu1 %vm208_vm2, %v174_v2 }
 0x130   :  { %973 = vmatmul.msk.f32.vlgmr.msra.gmra.mxu1 %vm183_vm3, %v175_v3 }
 0x138   :  { %974 = vmatmul.msk.f32.gmra.mxu1 %vm183_vm3, %v176_v4 }
 0x140   :  { %975 = vmatmul.msk.f32.gmra.mxu1 %vm183_vm3, %v177_v5 }
 0x148   :  { %976 = vmatmul.msk.f32.gmra.mxu1 %vm183_vm3, %v178_v6 }
 0x150   :  { %977 = vmatmul.msk.f32.gmra.mxu1 %vm183_vm3, %v179_v7 }
 0x158   :  { %978 = vmatmul.msk.f32.gmra.mxu1 %vm183_vm3, %v180_v8 }
 0x160   :  { %979 = vmatmul.msk.f32.gmra.mxu1 %vm183_vm3, %v181_v9 }
 0x168   :  { %980 = vmatmul.msk.f32.gmra.mxu1 %vm183_vm3, %v182_v10 }
 0x1ad   :  { %v229_v11 = vpop.f32.mrf.mxu1 }
 0x1ae   :  { %261 = vrot.lane.b32.xlu1 %v229_v11, %s1160_s24 }
 0x1b5   :  { %v232_v12 = vpop.f32.mrf.mxu1 }
 0x1b6   :  { %263 = vrot.lane.b32.xlu2 %v232_v12, %s1160_s24 }
 0x1bd   :  { %v235_v13 = vpop.f32.mrf.mxu1 }
 0x1be   :  { %265 = vrot.lane.b32.xlu0 %v235_v13, %s1160_s24 }
 0x1c5   :  { %v238_v16 = vpop.f32.mrf.mxu1 }
 0x1c6   :  { %267 = vrot.lane.b32.xlu2 %v238_v16, %s1160_s24 }
 0x1cd   :  { %v1287_v17 = vpop.f32.mrf.mxu1 }
 0x1ce   :  { %269 = vrot.lane.b32.xlu1 %v1287_v17, %s1160_s24 }
 0x1d5   :  { %v1290_v18 = vpop.f32.mrf.mxu1 }
 0x1d6   :  { %271 = vrot.lane.b32.xlu0 %v1290_v18, %s1160_s24 }
 0x1dd   :  { %v247_v23 = vpop.f32.mrf.mxu1 }
 0x1de   :  { %273 = vrot.lane.b32.xlu2 %v247_v23, %s1160_s24 }
 0x1e5   :  { %v1293_v24 = vpop.f32.mrf.mxu1 }
 0x1e6   :  { %275 = vrot.lane.b32.xlu1 %v1293_v24, %s1160_s24 }
 0x210   :  { %v264_v28 = vpop.permute.xlu2 %263 }
 0x211   :  { %v286_v29 = vadd.f32 %v264_v28, %v232_v12 }
 0x213   :  { %v982_v30 = vmul.f32 -1.442695, %v286_v29 }
 0x215   :  { %1003 = vpow2.f32 %v982_v30 }
 0x21b   :  { %v1004_v31 = vpop.eup %1003 }
 0x21c   :  { %v318_v32 = vadd.f32 1.0, %v1004_v31 }
 0x21e   :  { %1005 = vrcp.f32 %v318_v32  ;;  %v351_v42 = vand.u32 2147483648, %v318_v32  ;;  %v349_v44 = vand.u32 2147483647, %v318_v32  ;;  %vm345_vm5 = vweird.f32 %v318_v32 }
 0x220   :  { %v262_v33 = vpop.permute.xlu1 %261  ;;  %v268_v34 = vpop.permute.xlu2 %267  ;;  %v352_v49 = vor.u32 1.1754944e-38, %v351_v42  ;;  %vm350_vm7 = vcmp.eq.f32.partialorder %v349_v44, 8.507059e+37 }
 0x221   :  { %v285_v35 = vadd.f32 %v262_v33, %v229_v11  ;;  %v288_v36 = vadd.f32 %v268_v34, %v238_v16 }
 0x223   :  { %v981_v37 = vmul.f32 -1.442695, %v285_v35  ;;  %v984_v38 = vmul.f32 -1.442695, %v288_v36 }
 0x224   :  { %v1006_v39 = vpop.eup %1005 }
 0x225   :  { %1007 = vpow2.f32 %v981_v37  ;;  %v341_v40 = vmul.f32 %v1006_v39, %v318_v32  ;;  %vm346_vm4 = vweird.f32 %v1006_v39 }
 0x226   :  { %1009 = vpow2.f32 %v984_v38  ;;  %vm347_vm6 = vmor %vm345_vm5, %vm346_vm4 }
 0x227   :  { %v342_v41 = vsub.f32 1.0, %v341_v40 }
 0x229   :  { %v343_v43 = vmul.f32 %v1006_v39, %v342_v41 }
 0x22b   :  { %v1008_v45 = vpop.eup %1007  ;;  %v344_v46 = vadd.f32 %v1006_v39, %v343_v43 }
 0x22c   :  { %v1010_v47 = vpop.eup %1009  ;;  %v317_v48 = vadd.f32 1.0, %v1008_v45 }
 0x22d   :  { %v320_v50 = vadd.f32 1.0, %v1010_v47  ;;  %v348_v51 = vsel %vm347_vm6, %v1006_v39, %v344_v46 }
 0x22e   :  { %1011 = vrcp.f32 %v317_v48  ;;  %v353_v52 = vsel %vm350_vm7, %v352_v49, %v348_v51  ;;  %v334_v62 = vand.u32 2147483647, %v317_v48  ;;  %v336_v63 = vand.u32 2147483648, %v317_v48 }
 0x22f   :  { %1013 = vrcp.f32 %v320_v50  ;;  %452 = vperm.xlu2 %1001, %v353_v52   ;;  %v381_v3 = vand.u32 2147483648, %v320_v50  ;;  %v379_v5 = vand.u32 2147483647, %v320_v50  ;;  %vm330_vm10 = vweird.f32 %v317_v48 }
 0x230   :  { %v266_v53 = vpop.permute.xlu0 %265  ;;  %v337_v10 = vor.u32 1.1754944e-38, %v336_v63  ;;  %vm375_vm12 = vweird.f32 %v320_v50  ;;  %vm335_vm13 = vcmp.eq.f32.partialorder %v334_v62, 8.507059e+37 }
 0x231   :  { %v287_v54 = vadd.f32 %v266_v53, %v235_v13  ;;  %v382_v13 = vor.u32 1.1754944e-38, %v381_v3  ;;  %vm380_vm15 = vcmp.eq.f32.partialorder %v379_v5, 8.507059e+37 }
 0x233   :  { %v983_v55 = vmul.f32 -1.442695, %v287_v54 }
 0x234   :  { %v1012_v56 = vpop.eup %1011 }
 0x235   :  { %v1014_v57 = vpop.eup %1013  ;;  %1015 = vpow2.f32 %v983_v55  ;;  %v326_v58 = vmul.f32 %v1012_v56, %v317_v48  ;;  %vm331_vm8 = vweird.f32 %v1012_v56 }
 0x236   :  { %v371_v59 = vmul.f32 %v1014_v57, %v320_v50  ;;  %vm376_vm9 = vweird.f32 %v1014_v57  ;;  %vm332_vm11 = vmor %vm330_vm10, %vm331_vm8 }
 0x237   :  { %v327_v60 = vsub.f32 1.0, %v326_v58  ;;  %vm377_vm14 = vmor %vm375_vm12, %vm376_vm9 }
 0x238   :  { %v274_v61 = vpop.permute.xlu2 %273  ;;  %v372_v0 = vsub.f32 1.0, %v371_v59 }
 0x239   :  { %v291_v1 = vadd.f32 %v274_v61, %v247_v23  ;;  %v328_v2 = vmul.f32 %v1012_v56, %v327_v60 }
 0x23a   :  { %v373_v4 = vmul.f32 %v1014_v57, %v372_v0 }
 0x23b   :  { %v1016_v6 = vpop.eup %1015  ;;  %v987_v7 = vmul.f32 -1.442695, %v291_v1  ;;  %v329_v8 = vadd.f32 %v1012_v56, %v328_v2 }
 0x23c   :  { %v319_v9 = vadd.f32 1.0, %v1016_v6  ;;  %v374_v11 = vadd.f32 %v1014_v57, %v373_v4 }
 0x23d   :  { %1017 = vpow2.f32 %v987_v7  ;;  %v333_v12 = vsel %vm332_vm11, %v1012_v56, %v329_v8 }
 0x23e   :  { %1019 = vrcp.f32 %v319_v9  ;;  %v338_v16 = vsel %vm335_vm13, %v337_v10, %v333_v12  ;;  %v378_v23 = vsel %vm377_vm14, %v1014_v57, %v374_v11  ;;  %v366_v37 = vand.u32 2147483648, %v319_v9 }
 0x23f   :  { %447 = vperm.xlu0 %1000, %v338_v16   ;;  %v383_v25 = vsel %vm380_vm15, %v382_v13, %v378_v23  ;;  %v364_v40 = vand.u32 2147483647, %v319_v9  ;;  %vm360_vm1 = vweird.f32 %v319_v9 }
 0x240   :  { %462 = vperm.xlu2 %1001, %v383_v25   ;;  %v270_v28 = vpop.permute.xlu1 %269  ;;  %v367_v45 = vor.u32 1.1754944e-38, %v366_v37 }
 0x241   :  { %v289_v29 = vadd.f32 %v270_v28, %v1287_v17  ;;  %vm365_vm3 = vcmp.eq.f32.partialorder %v364_v40, 8.507059e+37  ;;  %v681_v40 = vld [vmem:[#allocation7 + $0xe0] sm:$0xff] }
 0x243   :  { %v1018_v30 = vpop.eup %1017  ;;  %v985_v31 = vmul.f32 -1.442695, %v289_v29 }
 0x244   :  { %v1020_v32 = vpop.eup %1019  ;;  %v323_v33 = vadd.f32 1.0, %v1018_v30 }
 0x245   :  { %1021 = vpow2.f32 %v985_v31  ;;  %v356_v34 = vmul.f32 %v1020_v32, %v319_v9  ;;  %vm361_vm0 = vweird.f32 %v1020_v32 }
 0x246   :  { %1023 = vrcp.f32 %v323_v33  ;;  %vm362_vm2 = vmor %vm360_vm1, %vm361_vm0  ;;  %v424_v51 = vand.u32 2147483647, %v323_v33  ;;  %vm420_vm5 = vweird.f32 %v323_v33 }
 0x247   :  { %v357_v35 = vsub.f32 1.0, %v356_v34 }
 0x248   :  { %v272_v36 = vpop.permute.xlu0 %271  ;;  %vm425_vm7 = vcmp.eq.f32.partialorder %v424_v51, 8.507059e+37  ;;  %v709_v51 = vld [vmem:[#allocation7 + $0x1c0] sm:$0xff] }
 0x249   :  { %v290_v38 = vadd.f32 %v272_v36, %v1290_v18  ;;  %v358_v39 = vmul.f32 %v1020_v32, %v357_v35  ;;  %v426_v18 = vand.u32 2147483648, %v323_v33 }
 0x24b   :  { %v1022_v41 = vpop.eup %1021  ;;  %v986_v42 = vmul.f32 -1.442695, %v290_v38  ;;  %v359_v43 = vadd.f32 %v1020_v32, %v358_v39  ;;  %v427_v56 = vor.u32 1.1754944e-38, %v426_v18  ;;  %v683_v39 = vld [vmem:[#allocation7 + $0xf0] sm:$0xff]  ;;  %v680_v18 = vld [vmem:[#allocation7 + $0xd8] sm:$0xff] }
 0x24c   :  { %v1024_v17 = vpop.eup %1023  ;;  %v321_v44 = vadd.f32 1.0, %v1022_v41  ;;  %717 = vmatpush.msra.mxu2 %v683_v39  ;;  %v679_v41 = vld [vmem:[#allocation7 + $0xd0] sm:$0xff]  ;;  %v708_v39 = vld [vmem:[#allocation7 + $0x1b8] sm:$0xff] }
 0x24d   :  { %1025 = vpow2.f32 %v986_v42  ;;  %v363_v46 = vsel %vm362_vm2, %v1020_v32, %v359_v43  ;;  %v416_v47 = vmul.f32 %v1024_v17, %v323_v33  ;;  %vm421_vm4 = vweird.f32 %v1024_v17  ;;  %v677_v42 = vld [vmem:[#allocation7 + $0xc0] sm:$0xff]  ;;  %v675_v43 = vld [vmem:[#allocation7 + $0xb0] sm:$0xff] }
 0x24e   :  { %1027 = vrcp.f32 %v321_v44  ;;  %v368_v48 = vsel %vm365_vm3, %v367_v45, %v363_v46  ;;  %vm422_vm6 = vmor %vm420_vm5, %vm421_vm4  ;;  %v396_v62 = vand.u32 2147483648, %v321_v44  ;;  %v394_v1 = vand.u32 2147483647, %v321_v44  ;;  %718 = vmatpush.msra.mxu2 %v681_v40  ;;  %v673_v45 = vld [vmem:[#allocation7 + $0xa0] sm:$0xff]  ;;  %v619_v40 = vld [vmem:[#allocation5 + $0xf0] sm:$0xff] }
 0x24f   :  { %457 = vperm.xlu1 %1002, %v368_v48   ;;  %v417_v49 = vsub.f32 1.0, %v416_v47  ;;  %vm390_vm9 = vweird.f32 %v321_v44  ;;  %v713_v46 = vld [vmem:[#allocation7 + $0x1e0] sm:$0xff]  ;;  %v682_v47 = vld [vmem:[#allocation7 + $0xe8] sm:$0xff]  ;;  %v671_v48 = vld [vmem:[#allocation7 + $0x90] sm:$0xff]  ;;  %vm584_vm5 = vcmask 1040384  }
 0x250   :  { %v397_v5 = vor.u32 1.1754944e-38, %v396_v62  ;;  %vm395_vm11 = vcmp.eq.f32.partialorder %v394_v1, 8.507059e+37  ;;  %719 = vmatpush.msra.mxu2 %v679_v41  ;;  %v661_v62 = vld [vmem:[#allocation7 + $0x40] sm:$0xff]  ;;  %v659_v1 = vld [vmem:[#allocation7 + $0x30] sm:$0xff] }
 0x251   :  { %v418_v50 = vmul.f32 %v1024_v17, %v417_v49  ;;  %v711_v49 = vld [vmem:[#allocation7 + $0x1d0] sm:$0xff] }
 0x252   :  { %720 = vmatpush.msra.mxu2 %v677_v42  ;;  %v643_v41 = vld [vmem:[#allocation5 + $0x1b0] sm:$0xff]  ;;  %v620_v42 = vld [vmem:[#allocation5 + $0xf8] sm:$0xff] }
 0x253   :  { %v1026_v52 = vpop.eup %1025  ;;  %v419_v53 = vadd.f32 %v1024_v17, %v418_v50  ;;  %v669_v50 = vld [vmem:[#allocation7 + $0x80] sm:$0xff] }
 0x254   :  { %v1028_v54 = vpop.eup %1027  ;;  %v322_v55 = vadd.f32 1.0, %v1026_v52  ;;  %721 = vmatpush.msra.mxu2 %v675_v43  ;;  %v678_v52 = vld [vmem:[#allocation7 + $0xc8] sm:$0xff] }
 0x255   :  { %v423_v57 = vsel %vm422_vm6, %v1024_v17, %v419_v53  ;;  %v386_v58 = vmul.f32 %v1028_v54, %v321_v44  ;;  %vm391_vm8 = vweird.f32 %v1028_v54  ;;  %v715_v17 = vld [vmem:[#allocation7 + $0x1f0] sm:$0xff]  ;;  %v684_v44 = vld [vmem:[#allocation7 + $0xf8] sm:$0xff]  ;;  %v706_v43 = vld [vmem:[#allocation7 + $0x1a8] sm:$0xff] }
 0x256   :  { %1029 = vrcp.f32 %v322_v55  ;;  %v428_v59 = vsel %vm425_vm7, %v427_v56, %v423_v57  ;;  %vm392_vm10 = vmor %vm390_vm9, %vm391_vm8  ;;  %v411_v10 = vand.u32 2147483648, %v322_v55  ;;  %vm405_vm13 = vweird.f32 %v322_v55  ;;  %737 = vmatpush.msra.mxu3 %v715_v17  ;;  %757 = vmatpush.msrb.mxu0 %v684_v44  ;;  %v667_v53 = vld [vmem:[#allocation7 + $0x70] sm:$0xff]  ;;  %v665_v56 = vld [vmem:[#allocation7 + $0x60] sm:$0xff] }
 0x257   :  { %477 = vperm.xlu2 %1001, %v428_v59   ;;  %v387_v60 = vsub.f32 1.0, %v386_v58  ;;  %722 = vmatpush.msra.mxu2 %v673_v45  ;;  %v705_v57 = vld [vmem:[#allocation7 + $0x1a0] sm:$0xff]  ;;  %v674_v58 = vld [vmem:[#allocation7 + $0xa8] sm:$0xff]  ;;  %v663_v59 = vld [vmem:[#allocation7 + $0x50] sm:$0xff] }
 0x258   :  { %v276_v61 = vpop.permute.xlu1 %275  ;;  %v412_v23 = vor.u32 1.1754944e-38, %v411_v10  ;;  %738 = vmatpush.msra.mxu3 %v713_v46  ;;  %758 = vmatpush.msrb.mxu0 %v682_v47  ;;  %v653_v10 = vld [vmem:[#allocation7] sm:$0xff]  ;;  %v618_v45 = vld [vmem:[#allocation5 + $0xe8] sm:$0xff]  ;;  %v704_v46 = vld [vmem:[#allocation7 + $0x198] sm:$0xff] }
 0x259   :  { %v292_v63 = vadd.f32 %v276_v61, %v1293_v24  ;;  %v388_v0 = vmul.f32 %v1028_v54, %v387_v60  ;;  %v409_v24 = vand.u32 2147483647, %v322_v55  ;;  %723 = vmatpush.msra.mxu2 %v671_v48  ;;  %v703_v60 = vld [vmem:[#allocation7 + $0x190] sm:$0xff]  ;;  %v672_v61 = vld [vmem:[#allocation7 + $0x98] sm:$0xff]  ;;  %v617_v17 = vld [vmem:[#allocation5 + $0xe0] sm:$0xff] }
 0x25a   :  { %739 = vmatpush.msra.mxu3 %v711_v49  ;;  %759 = vmatpush.msrb.mxu0 %v680_v18  ;;  %v641_v44 = vld [vmem:[#allocation5 + $0x1a0] sm:$0xff]  ;;  %v615_v47 = vld [vmem:[#allocation5 + $0xd0] sm:$0xff]  ;;  %v616_v49 = vld [vmem:[#allocation5 + $0xd8] sm:$0xff] }
 0x25b   :  { %v988_v2 = vmul.f32 -1.442695, %v292_v63  ;;  %v389_v3 = vadd.f32 %v1028_v54, %v388_v0  ;;  %vm410_vm15 = vcmp.eq.f32.partialorder %v409_v24, 8.507059e+37  ;;  %724 = vmatpush.msra.mxu2 %v669_v50  ;;  %v701_v63 = vld [vmem:[#allocation7 + $0x180] sm:$0xff]  ;;  %v670_v0 = vld [vmem:[#allocation7 + $0x88] sm:$0xff]  ;;  %v639_v48 = vld [vmem:[#allocation5 + $0x190] sm:$0xff] }
 0x25c   :  { %v1030_v4 = vpop.eup %1029  ;;  %740 = vmatpush.msra.mxu3 %v709_v51  ;;  %760 = vmatpush.msrb.mxu0 %v678_v52  ;;  %v662_v24 = vld [vmem:[#allocation7 + $0x48] sm:$0xff]  ;;  %v613_v50 = vld [vmem:[#allocation5 + $0xc0] sm:$0xff] }
 0x25d   :  { %1031 = vpow2.f32 %v988_v2  ;;  %v393_v6 = vsel %vm392_vm10, %v1028_v54, %v389_v3  ;;  %v401_v7 = vmul.f32 %v1030_v4, %v322_v55  ;;  %vm406_vm12 = vweird.f32 %v1030_v4  ;;  %v707_v54 = vld [vmem:[#allocation7 + $0x1b0] sm:$0xff]  ;;  %v676_v55 = vld [vmem:[#allocation7 + $0xb8] sm:$0xff]  ;;  %725 = vmatpush.msra.mxu2 %v667_v53  ;;  %v702_v18 = vld [vmem:[#allocation7 + $0x188] sm:$0xff] }
 0x25e   :  { %v398_v8 = vsel %vm395_vm11, %v397_v5, %v393_v6  ;;  %vm407_vm14 = vmor %vm405_vm13, %vm406_vm12  ;;  %741 = vmatpush.msra.mxu3 %v707_v54  ;;  %761 = vmatpush.msrb.mxu0 %v676_v55  ;;  %v699_v2 = vld [vmem:[#allocation7 + $0x170] sm:$0xff]  ;;  %v668_v3 = vld [vmem:[#allocation7 + $0x78] sm:$0xff] }
 0x25f   :  { %467 = vperm.xlu1 %1002, %v398_v8   ;;  %v402_v9 = vsub.f32 1.0, %v401_v7  ;;  %726 = vmatpush.msra.mxu2 %v665_v56  ;;  %v697_v5 = vld [vmem:[#allocation7 + $0x160] sm:$0xff]  ;;  %v666_v6 = vld [vmem:[#allocation7 + $0x68] sm:$0xff]  ;;  %v655_v7 = vld [vmem:[#allocation7 + $0x10] sm:$0xff] }
 0x260   :  { %742 = vmatpush.msra.mxu3 %v705_v57  ;;  %762 = vmatpush.msrb.mxu0 %v674_v58  ;;  %v695_v8 = vld [vmem:[#allocation7 + $0x150] sm:$0xff]  ;;  %v637_v51 = vld [vmem:[#allocation5 + $0x180] sm:$0xff]  ;;  %v614_v52 = vld [vmem:[#allocation5 + $0xc8] sm:$0xff] }
 0x261   :  { %v403_v11 = vmul.f32 %v1030_v4, %v402_v9  ;;  %727 = vmatpush.msra.mxu2 %v663_v59  ;;  %v664_v9 = vld [vmem:[#allocation7 + $0x58] sm:$0xff]  ;;  %v611_v54 = vld [vmem:[#allocation5 + $0xb0] sm:$0xff]  ;;  %v698_v59 = vld [vmem:[#allocation7 + $0x168] sm:$0xff] }
 0x262   :  { %743 = vmatpush.msra.mxu3 %v703_v60  ;;  %763 = vmatpush.msrb.mxu0 %v672_v61  ;;  %v700_v53 = vld [vmem:[#allocation7 + $0x178] sm:$0xff]  ;;  %v635_v55 = vld [vmem:[#allocation5 + $0x170] sm:$0xff]  ;;  %v609_v60 = vld [vmem:[#allocation5 + $0xa0] sm:$0xff] }
 0x263   :  { %v1032_v12 = vpop.eup %1031  ;;  %v404_v13 = vadd.f32 %v1030_v4, %v403_v11  ;;  %728 = vmatpush.msra.mxu2 %v661_v62  ;;  %v693_v11 = vld [vmem:[#allocation7 + $0x140] sm:$0xff]  ;;  %v612_v58 = vld [vmem:[#allocation5 + $0xb8] sm:$0xff] }
 0x264   :  { %v324_v16 = vadd.f32 1.0, %v1032_v12  ;;  %744 = vmatpush.msra.mxu3 %v701_v63  ;;  %764 = vmatpush.msrb.mxu0 %v670_v0  ;;  %v716_v12 = vld [vmem:[#allocation7 + $0x1f8] sm:$0xff]  ;;  %v633_v61 = vld [vmem:[#allocation5 + $0x160] sm:$0xff]  ;;  %v610_v63 = vld [vmem:[#allocation5 + $0xa8] sm:$0xff] }
 0x265   :  { %v408_v25 = vsel %vm407_vm14, %v1030_v4, %v404_v13  ;;  %v657_v4 = vld [vmem:[#allocation7 + $0x20] sm:$0xff]  ;;  %729 = vmatpush.msra.mxu2 %v659_v1  ;;  %v651_v13 = vld [vmem:[#allocation5 + $0x1f0] sm:$0xff]  ;;  %v696_v1 = vld [vmem:[#allocation7 + $0x158] sm:$0xff] }
 0x266   :  { %1033 = vrcp.f32 %v324_v16  ;;  %v413_v28 = vsel %vm410_vm15, %v412_v23, %v408_v25  ;;  %v441_v32 = vand.u32 2147483648, %v324_v16  ;;  %v439_v34 = vand.u32 2147483647, %v324_v16  ;;  %745 = vmatpush.msra.mxu3 %v699_v2  ;;  %765 = vmatpush.msrb.mxu0 %v668_v3  ;;  %v660_v23 = vld [vmem:[#allocation7 + $0x38] sm:$0xff]  ;;  %v714_v25 = vld [vmem:[#allocation7 + $0x1e8] sm:$0xff]  ;;  %v607_v2 = vld [vmem:[#allocation5 + $0x90] sm:$0xff] }
 0x267   :  { %472 = vperm.xlu0 %1000, %v413_v28   ;;  %vm435_vm1 = vweird.f32 %v324_v16  ;;  %730 = vmatpush.msra.mxu2 %v657_v4  ;;  %v649_v28 = vld [vmem:[#allocation5 + $0x1e0] sm:$0xff]  ;;  %v631_v3 = vld [vmem:[#allocation5 + $0x150] sm:$0xff]  ;;  %v608_v4 = vld [vmem:[#allocation5 + $0x98] sm:$0xff] }
 0x268   :  { %v442_v36 = vor.u32 1.1754944e-38, %v441_v32  ;;  %vm440_vm3 = vcmp.eq.f32.partialorder %v439_v34, 8.507059e+37  ;;  %746 = vmatpush.msra.mxu3 %v697_v5  ;;  %766 = vmatpush.msrb.mxu0 %v666_v6  ;;  %v647_v32 = vld [vmem:[#allocation5 + $0x1d0] sm:$0xff]  ;;  %v656_v34 = vld [vmem:[#allocation7 + $0x18] sm:$0xff]  ;;  %v694_v5 = vld [vmem:[#allocation7 + $0x148] sm:$0xff] }
 0x269   :  { %731 = vmatpush.msra.mxu2 %v655_v7  ;;  %817 = vmatpush.msrb.mxu1 %v651_v13  ;;  %v690_v13 = vld [vmem:[#allocation7 + $0x128] sm:$0xff] }
 0x26a   :  { %747 = vmatpush.msra.mxu3 %v695_v8  ;;  %767 = vmatpush.msrb.mxu0 %v664_v9  ;;  %v605_v8 = vld [vmem:[#allocation5 + $0x80] sm:$0xff]  ;;  %v606_v9 = vld [vmem:[#allocation5 + $0x88] sm:$0xff] }
 0x26b   :  { %732 = vmatpush.msra.mxu2 %v653_v10  ;;  %818 = vmatpush.msrb.mxu1 %v649_v28  ;;  %v692_v10 = vld [vmem:[#allocation7 + $0x138] sm:$0xff]  ;;  %v625_v28 = vld [vmem:[#allocation5 + $0x120] sm:$0xff] }
 0x26c   :  { %v1034_v29 = vpop.eup %1033  ;;  %748 = vmatpush.msra.mxu3 %v693_v11  ;;  %768 = vmatpush.msrb.mxu0 %v662_v24  ;;  %v603_v24 = vld [vmem:[#allocation5 + $0x70] sm:$0xff] }
 0x26d   :  { %v431_v30 = vmul.f32 %v1034_v29, %v324_v16  ;;  %vm436_vm0 = vweird.f32 %v1034_v29  ;;  %v691_v16 = vld [vmem:[#allocation7 + $0x130] sm:$0xff]  ;;  %777 = vmatpush.msrb.mxu2 %v716_v12  ;;  %819 = vmatpush.msrb.mxu1 %v647_v32 }
 0x26e   :  { %vm437_vm2 = vmor %vm435_vm1, %vm436_vm0  ;;  %749 = vmatpush.msra.mxu3 %v691_v16  ;;  %769 = vmatpush.msrb.mxu0 %v660_v23  ;;  %v627_v12 = vld [vmem:[#allocation5 + $0x130] sm:$0xff] }
 0x26f   :  { %v432_v31 = vsub.f32 1.0, %v431_v30  ;;  %v658_v30 = vld [vmem:[#allocation7 + $0x28] sm:$0xff]  ;;  %778 = vmatpush.msrb.mxu2 %v714_v25  ;;  %v601_v25 = vld [vmem:[#allocation5 + $0x60] sm:$0xff] }
 0x270   :  { %770 = vmatpush.msrb.mxu0 %v658_v30  ;;  %v688_v30 = vld [vmem:[#allocation7 + $0x118] sm:$0xff] }
 0x271   :  { %v433_v33 = vmul.f32 %v1034_v29, %v432_v31  ;;  %v712_v31 = vld [vmem:[#allocation7 + $0x1d8] sm:$0xff] }
 0x272   :  { %779 = vmatpush.msrb.mxu2 %v712_v31  ;;  %771 = vmatpush.msrb.mxu0 %v656_v34  ;;  %v623_v34 = vld [vmem:[#allocation5 + $0x110] sm:$0xff] }
 0x273   :  { %v434_v35 = vadd.f32 %v1034_v29, %v433_v33  ;;  %v687_v33 = vld [vmem:[#allocation7 + $0x110] sm:$0xff] }
 0x275   :  { %v438_v37 = vsel %vm437_vm2, %v1034_v29, %v434_v35  ;;  %v689_v29 = vld [vmem:[#allocation7 + $0x120] sm:$0xff]  ;;  %v710_v35 = vld [vmem:[#allocation7 + $0x1c8] sm:$0xff] }
 0x276   :  { %v443_v38 = vsel %vm440_vm3, %v442_v36, %v438_v37  ;;  %750 = vmatpush.msra.mxu3 %v689_v29  ;;  %v645_v36 = vld [vmem:[#allocation5 + $0x1c0] sm:$0xff]  ;;  %780 = vmatpush.msrb.mxu2 %v710_v35  ;;  %v602_v29 = vld [vmem:[#allocation5 + $0x68] sm:$0xff] }
 0x277   :  { %482 = vperm.xlu1 %1002, %v443_v38   ;;  %v685_v37 = vld [vmem:[#allocation7 + $0x100] sm:$0xff]  ;;  %v654_v38 = vld [vmem:[#allocation7 + $0x8] sm:$0xff]  ;;  %820 = vmatpush.msrb.mxu1 %v645_v36  ;;  %v600_v36 = vld [vmem:[#allocation5 + $0x58] sm:$0xff] }
 0x278   :  { %751 = vmatpush.msra.mxu3 %v687_v33  ;;  %772 = vmatpush.msrb.mxu0 %v654_v38  ;;  %v597_v38 = vld [vmem:[#allocation5 + $0x40] sm:$0xff] }
 0x279   :  { %781 = vmatpush.msrb.mxu2 %v708_v39  ;;  %821 = vmatpush.msrb.mxu1 %v643_v41  ;;  %v621_v39 = vld [vmem:[#allocation5 + $0x100] sm:$0xff] }
 0x27a   :  { %752 = vmatpush.msra.mxu3 %v685_v37  ;;  %837 = vmatpush.msra.mxu0 %v620_v42  ;;  %v686_v37 = vld [vmem:[#allocation7 + $0x108] sm:$0xff] }
 0x27b   :  { %782 = vmatpush.msrb.mxu2 %v706_v43  ;;  %822 = vmatpush.msrb.mxu1 %v641_v44  ;;  %v595_v44 = vld [vmem:[#allocation5 + $0x30] sm:$0xff] }
 0x27c   :  { %797 = vmatpush.msrb.mxu3 %v619_v40  ;;  %838 = vmatpush.msra.mxu0 %v618_v45  ;;  %v1162_v40 = vmov 32.0   ;;  %v596_v45 = vld [vmem:[#allocation5 + $0x38] sm:$0xff] }
 0x27d   :  { %783 = vmatpush.msrb.mxu2 %v704_v46  ;;  %823 = vmatpush.msrb.mxu1 %v639_v48  ;;  %1035 = vrcp.f32 %v1162_v40 }
 0x27e   :  { %798 = vmatpush.msrb.mxu3 %v617_v17  ;;  %839 = vmatpush.msra.mxu0 %v616_v49 }
 0x27f   :  { %784 = vmatpush.msrb.mxu2 %v702_v18  ;;  %824 = vmatpush.msrb.mxu1 %v637_v51  ;;  %v1045_v51 = vld [vmem:[#allocation2 + $0x50] sm:$0xff] }
 0x280   :  { %799 = vmatpush.msrb.mxu3 %v615_v47  ;;  %840 = vmatpush.msra.mxu0 %v614_v52 }
 0x281   :  { %785 = vmatpush.msrb.mxu2 %v700_v53  ;;  %825 = vmatpush.msrb.mxu1 %v635_v55  ;;  %v1046_v53 = vld [vmem:[#allocation2 + $0x58] sm:$0xff]  ;;  %v594_v55 = vld [vmem:[#allocation5 + $0x28] sm:$0xff] }
 0x282   :  { %800 = vmatpush.msrb.mxu3 %v613_v50  ;;  %841 = vmatpush.msra.mxu0 %v612_v58  ;;  %v593_v50 = vld [vmem:[#allocation5 + $0x20] sm:$0xff] }
 0x283   :  { %786 = vmatpush.msrb.mxu2 %v698_v59  ;;  %826 = vmatpush.msrb.mxu1 %v633_v61  ;;  %v1047_v58 = vld [vmem:[#allocation2 + $0x40] sm:$0xff] }
 0x284   :  { %801 = vmatpush.msrb.mxu3 %v611_v54  ;;  %842 = vmatpush.msra.mxu0 %v610_v63 }
 0x285   :  { %787 = vmatpush.msrb.mxu2 %v696_v1  ;;  %827 = vmatpush.msrb.mxu1 %v631_v3 }
 0x286   :  { %802 = vmatpush.msrb.mxu3 %v609_v60  ;;  %843 = vmatpush.msra.mxu0 %v608_v4  ;;  %v1048_v60 = vld [vmem:[#allocation2 + $0x48] sm:$0xff] }
 0x287   :  { %788 = vmatpush.msrb.mxu2 %v694_v5  ;;  %v589_v5 = vld [vmem:[#allocation5] sm:$0xff] }
 0x288   :  { %803 = vmatpush.msrb.mxu3 %v607_v2  ;;  %844 = vmatpush.msra.mxu0 %v606_v9  ;;  %v590_v9 = vld [vmem:[#allocation5 + $0x8] sm:$0xff] }
 0x289   :  { %v453_v56 = vpop.permute.xlu2 %452  ;;  %789 = vmatpush.msrb.mxu2 %v692_v10 }
 0x28a   :  { %v1303_v6 = vmul.f32 %v453_v56, %v1224_v22  ;;  %804 = vmatpush.msrb.mxu3 %v605_v8  ;;  %v1324_v35 = vmul.f32 %v453_v56, %v1222_v21  ;;  %v598_v21 = vld [vmem:[#allocation5 + $0x48] sm:$0xff]  ;;  %v591_v56 = vld [vmem:[#allocation5 + $0x10] sm:$0xff] }
 0x28b   :  { %790 = vmatpush.msrb.mxu2 %v690_v13 }
 0x28c   :  { %805 = vmatpush.msrb.mxu3 %v603_v24 }
 0x28d   :  { %791 = vmatpush.msrb.mxu2 %v688_v30 }
 0x28e   :  { %806 = vmatpush.msrb.mxu3 %v601_v25 }
 0x28f   :  { %792 = vmatpush.msrb.mxu2 %v686_v37 }
 0x29a   :  { %v463_v22 = vpop.permute.xlu2 %462 }
 0x29b   :  { %v1315_v31 = vmul.f32 %v463_v22, %v1212_v14  ;;  %v1318_v32 = vmul.f32 %v463_v22, %v1214_v15 }
 0x29d   :  { %v529_v41 = vmax.f32 %v1324_v35, %v1315_v31  ;;  %v538_v42 = vmax.f32 %v1303_v6, %v1318_v32 }
 0x2b1   :  { %v448_v57 = vpop.permute.xlu0 %447  ;;  %v478_v63 = vpop.permute.xlu2 %477 }
 0x2b2   :  { %v1300_v0 = vmul.f32 %v448_v57, %v1234_v27  ;;  %v629_v27 = vld [vmem:[#allocation5 + $0x140] sm:$0xff]  ;;  %v1321_v33 = vmul.f32 %v448_v57, %v1232_v26  ;;  %v1342_v57 = vpop.eup %1035 }
 0x2b3   :  { %828 = vmatpush.msrb.mxu1 %v629_v27  ;;  %v520_v10 = vmul.f32 32.0, %v1342_v57  ;;  %vm524_vm4 = vweird.f32 %v1342_v57 }
 0x2b4   :  { %v510_v11 = vadd.f32 %v1303_v6, %v1300_v0  ;;  %v501_v43 = vadd.f32 %v1324_v35, %v1321_v33 }
 0x2b5   :  { %829 = vmatpush.msrb.mxu1 %v627_v12  ;;  %v1050_v12 = vld [vmem:[#allocation2 + $0x68] sm:$0xff] }
 0x2b6   :  { %v1356_v22 = vmul.f32 %v1050_v12, %v478_v63 }
 0x2b7   :  { %830 = vmatpush.msrb.mxu1 %v625_v28 }
 0x2b9   :  { %831 = vmatpush.msrb.mxu1 %v623_v34 }
 0x2bb   :  { %832 = vmatpush.msrb.mxu1 %v621_v39 }
 0x2c1   :  { %v458_v62 = vpop.permute.xlu1 %457 }
 0x2c2   :  { %v1306_v7 = vmul.f32 %v458_v62, %v1220_v20  ;;  %v604_v20 = vld [vmem:[#allocation5 + $0x78] sm:$0xff]  ;;  %v1311_v16 = vmul.f32 %v458_v62, %v1218_v19  ;;  %v599_v19 = vld [vmem:[#allocation5 + $0x50] sm:$0xff] }
 0x2c3   :  { %845 = vmatpush.msra.mxu0 %v604_v20  ;;  %807 = vmatpush.msrb.mxu3 %v599_v19  ;;  %v592_v62 = vld [vmem:[#allocation5 + $0x18] sm:$0xff]  ;;  %v1051_v19 = vld [vmem:[#allocation2 + $0x70] sm:$0xff] }
 0x2c4   :  { %v511_v23 = vadd.f32 %v510_v11, %v1306_v7  ;;  %v528_v15 = vmax.f32 %v1321_v33, %v1311_v16  ;;  %v537_v26 = vmax.f32 %v1300_v0, %v1306_v7  ;;  %v502_v46 = vadd.f32 %v501_v43, %v1311_v16  ;;  %v1049_v11 = vld [vmem:[#allocation2 + $0x60] sm:$0xff] }
 0x2c5   :  { %846 = vmatpush.msra.mxu0 %v602_v29  ;;  %808 = vmatpush.msrb.mxu3 %v597_v38  ;;  %v1354_v24 = vmul.f32 %v1049_v11, %v478_v63 }
 0x2c6   :  { %v512_v14 = vadd.f32 %v511_v23, %v1318_v32  ;;  %v530_v48 = vmax.f32 %v528_v15, %v529_v41  ;;  %v539_v49 = vmax.f32 %v537_v26, %v538_v42  ;;  %v503_v1 = vadd.f32 %v502_v46, %v1315_v31 }
 0x2c7   :  { %847 = vmatpush.msra.mxu0 %v600_v36  ;;  %809 = vmatpush.msrb.mxu3 %v595_v44  ;;  %v1052_v36 = vld [vmem:[#allocation2 + $0x78] sm:$0xff]  ;;  %v521_v26 = vsub.f32 1.0, %v520_v10 }
 0x2c8   :  { %v513_v47 = vrot.slane %v512_v14, 4  ;;  %v531_v3 = vrot.slane %v530_v48, 4  ;;  %v540_v4 = vrot.slane %v539_v49, 4  ;;  %v504_v20 = vrot.slane %v503_v1, 4 }
 0x2c9   :  { %848 = vmatpush.msra.mxu0 %v598_v21  ;;  %810 = vmatpush.msrb.mxu3 %v593_v50 }
 0x2ca   :  { %v514_v2 = vadd.f32 %v513_v47, %v512_v14  ;;  %v532_v23 = vmax.f32 %v530_v48, %v531_v3  ;;  %v541_v25 = vmax.f32 %v539_v49, %v540_v4  ;;  %v505_v41 = vadd.f32 %v504_v20, %v503_v1 }
 0x2cb   :  { %849 = vmatpush.msra.mxu0 %v596_v45  ;;  %811 = vmatpush.msrb.mxu3 %v591_v56  ;;  %v522_v48 = vmul.f32 %v1342_v57, %v521_v26 }
 0x2cc   :  { %v515_v28 = vrot.slane %v514_v2, 2  ;;  %v533_v42 = vrot.slane %v532_v23, 2  ;;  %v542_v43 = vrot.slane %v541_v25, 2 }
 0x2cd   :  { %850 = vmatpush.msra.mxu0 %v594_v55  ;;  %812 = vmatpush.msrb.mxu3 %v589_v5 }
 0x2ce   :  { %v543_v55 = vmax.f32 %v541_v25, %v542_v43  ;;  %v650_v43 = vld [vmem:[#allocation5 + $0x1e8] sm:$0xff] }
 0x2cf   :  { %851 = vmatpush.msra.mxu0 %v592_v62 }
 0x2d1   :  { %v468_v18 = vpop.permute.xlu1 %467  ;;  %852 = vmatpush.msra.mxu0 %v590_v9  ;;  %v544_v9 = vrot.slane %v543_v55, 1 }
 0x2d2   :  { %v1344_v59 = vmul.f32 %v1047_v58, %v468_v18  ;;  %v1346_v61 = vmul.f32 %v1048_v60, %v468_v18  ;;  %v506_v58 = vrot.slane %v505_v41, 2 }
 0x2d4   :  { %v566_v14 = vmax.f32 %v1344_v59, %v1354_v24  ;;  %v575_v15 = vmax.f32 %v1346_v61, %v1356_v22  ;;  %v507_v10 = vadd.f32 %v506_v58, %v505_v41  ;;  %v630_v58 = vld [vmem:[#allocation5 + $0x148] sm:$0xff] }
 0x2d9   :  { %v473_v17 = vpop.permute.xlu0 %472 }
 0x2da   :  { %v1338_v52 = vmul.f32 %v1045_v51, %v473_v17  ;;  %v1340_v54 = vmul.f32 %v1046_v53, %v473_v17  ;;  %v516_v17 = vadd.f32 %v515_v28, %v514_v2  ;;  %v534_v53 = vmax.f32 %v532_v23, %v533_v42  ;;  %v652_v42 = vld [vmem:[#allocation5 + $0x1f8] sm:$0xff] }
 0x2db   :  { %v523_v2 = vadd.f32 %v1342_v57, %v522_v48 }
 0x2dc   :  { %v546_v8 = vadd.f32 %v1338_v52, %v1344_v59  ;;  %v555_v27 = vadd.f32 %v1340_v54, %v1346_v61  ;;  %v517_v56 = vrot.slane %v516_v17, 1 }
 0x2dd   :  { %v525_v23 = vsel %vm524_vm4, %v1342_v57, %v523_v2 }
 0x2de   :  { %v547_v29 = vadd.f32 %v546_v8, %v1354_v24  ;;  %v556_v30 = vadd.f32 %v555_v27, %v1356_v22  ;;  %v535_v27 = vrot.slane %v534_v53, 1  ;;  %v518_v20 = vadd.f32 %v517_v56, %v516_v17  ;;  %v632_v56 = vld [vmem:[#allocation5 + $0x158] sm:$0xff] }
 0x2e9   :  { %v483_v13 = vpop.permute.xlu1 %482 }
 0x2ea   :  { %v1360_v34 = vmul.f32 %v1051_v19, %v483_v13  ;;  %v1362_v37 = vmul.f32 %v1052_v36, %v483_v13  ;;  %v536_v19 = vmax.f32 %v534_v53, %v535_v27  ;;  %v545_v36 = vmax.f32 %v543_v55, %v544_v9  ;;  %v636_v53 = vld [vmem:[#allocation5 + $0x178] sm:$0xff]  ;;  %v634_v55 = vld [vmem:[#allocation5 + $0x168] sm:$0xff] }
 0x2ec   :  { %v548_v38 = vadd.f32 %v547_v29, %v1360_v34  ;;  %v557_v39 = vadd.f32 %v556_v30, %v1362_v37  ;;  %v567_v21 = vmax.f32 %v1338_v52, %v1360_v34  ;;  %v576_v40 = vmax.f32 %v1340_v54, %v1362_v37 }
 0x2ee   :  { %v549_v44 = vrot.slane %v548_v38, 4  ;;  %v558_v45 = vrot.slane %v557_v39, 4  ;;  %v568_v46 = vmax.f32 %v566_v14, %v567_v21  ;;  %v577_v47 = vmax.f32 %v575_v15, %v576_v40 }
 0x2ef   :  { %v508_v14 = vrot.slane %v507_v10, 1 }
 0x2f0   :  { %v550_v49 = vadd.f32 %v549_v44, %v548_v38  ;;  %v559_v18 = vadd.f32 %v558_v45, %v557_v39  ;;  %v569_v50 = vrot.slane %v568_v46, 4  ;;  %v578_v51 = vrot.slane %v577_v47, 4  ;;  %v648_v44 = vld [vmem:[#allocation5 + $0x1d8] sm:$0xff] }
 0x2f1   :  { %v527_v38 = vmul.f32 %v525_v23, %v518_v20  ;;  %v509_v17 = vadd.f32 %v508_v14, %v507_v10 }
 0x2f2   :  { %v551_v60 = vrot.slane %v550_v49, 2  ;;  %v560_v62 = vrot.slane %v559_v18, 2  ;;  %v570_v63 = vmax.f32 %v568_v46, %v569_v50  ;;  %v579_v1 = vmax.f32 %v577_v47, %v578_v51  ;;  %v646_v46 = vld [vmem:[#allocation5 + $0x1c8] sm:$0xff]  ;;  %v640_v50 = vld [vmem:[#allocation5 + $0x198] sm:$0xff] }
 0x2f3   :  { %v526_v47 = vmul.f32 %v525_v23, %v509_v17  ;;  %v638_v51 = vld [vmem:[#allocation5 + $0x188] sm:$0xff] }
 0x2f4   :  { %v552_v3 = vadd.f32 %v551_v60, %v550_v49  ;;  %v561_v4 = vadd.f32 %v560_v62, %v559_v18  ;;  %v571_v5 = vrot.slane %v570_v63, 2  ;;  %v580_v8 = vrot.slane %v579_v1, 2  ;;  %v644_v49 = vld [vmem:[#allocation5 + $0x1b8] sm:$0xff]  ;;  %v642_v18 = vld [vmem:[#allocation5 + $0x1a8] sm:$0xff] }
 0x2f5   :  { %v628_v60 = vld [vmem:[#allocation5 + $0x138] sm:$0xff]  ;;  %v626_v62 = vld [vmem:[#allocation5 + $0x128] sm:$0xff] }
 0x2f6   :  { %v572_v11 = vmax.f32 %v570_v63, %v571_v5  ;;  %v581_v12 = vmax.f32 %v579_v1, %v580_v8  ;;  %v562_v13 = vrot.slane %v561_v4, 1  ;;  %v553_v30 = vrot.slane %v552_v3, 1  ;;  %v624_v63 = vld [vmem:[#allocation5 + $0x118] sm:$0xff]  ;;  %v622_v1 = vld [vmem:[#allocation5 + $0x108] sm:$0xff] }
 0x2f8   :  { %v573_v25 = vrot.slane %v572_v11, 1  ;;  %v582_v28 = vrot.slane %v581_v12, 1  ;;  %v563_v29 = vadd.f32 %v562_v13, %v561_v4  ;;  %v554_v57 = vadd.f32 %v553_v30, %v552_v3 }
 0x2fa   :  { %v574_v15 = vmax.f32 %v572_v11, %v573_v25  ;;  %v583_v26 = vmax.f32 %v581_v12, %v582_v28  ;;  %v565_v39 = vmul.f32 %v563_v29, %v525_v23  ;;  %v564_v45 = vmul.f32 %v554_v57, %v525_v23 }
 0x2fc   :  { %v587_v21 = vsel %vm584_vm5, %v536_v19, %v574_v15  ;;  %v588_v40 = vsel %vm584_vm5, %v545_v36, %v583_v26  ;;  %v586_v41 = vsel %vm584_vm5, %v527_v38, %v565_v39  ;;  %v585_v48 = vsel %vm584_vm5, %v526_v47, %v564_v45 }
 0x2fd   :  { %733 = vmatmul.f32.vlgmr.msra.gmra.mxu2 %v587_v21  ;;  %753 = vmatmul.f32.vlgmr.msra.gmra.mxu3 %v588_v40 }
 0x2fe   :  { %773 = vmatmul.f32.vlgmr.msrb.gmra.mxu0 %v587_v21  ;;  %833 = vmatmul.f32.vlgmr.msrb.gmra.mxu1 %v586_v41 }
 0x2ff   :  { %857 = vmatpush.msra.mxu2 %v652_v42 }
 0x301   :  { %858 = vmatpush.msra.mxu2 %v650_v43 }
 0x303   :  { %859 = vmatpush.msra.mxu2 %v648_v44 }
 0x305   :  { %860 = vmatpush.msra.mxu2 %v646_v46  ;;  %813 = vmatmul.f32.vlgmr.msrb.gmra.mxu3 %v585_v48 }
 0x306   :  { %793 = vmatmul.f32.vlgmr.msrb.gmra.mxu2 %v588_v40  ;;  %853 = vmatmul.f32.vlgmr.msra.gmra.mxu0 %v585_v48 }
 0x307   :  { %861 = vmatpush.msra.mxu2 %v644_v49 }
 0x309   :  { %862 = vmatpush.msra.mxu2 %v642_v18 }
 0x30b   :  { %863 = vmatpush.msra.mxu2 %v640_v50 }
 0x30d   :  { %864 = vmatpush.msra.mxu2 %v638_v51 }
 0x30f   :  { %865 = vmatpush.msra.mxu2 %v636_v53 }
 0x311   :  { %866 = vmatpush.msra.mxu2 %v634_v55 }
 0x313   :  { %867 = vmatpush.msra.mxu2 %v632_v56 }
 0x315   :  { %868 = vmatpush.msra.mxu2 %v630_v58 }
 0x317   :  { %869 = vmatpush.msra.mxu2 %v628_v60 }
 0x319   :  { %870 = vmatpush.msra.mxu2 %v626_v62 }
 0x31b   :  { %871 = vmatpush.msra.mxu2 %v624_v63 }
 0x31d   :  { %872 = vmatpush.msra.mxu2 %v622_v1 }
 0x31e   :  { %873 = vmatmul.f32.vlgmr.msra.gmra.mxu2 %v586_v41 }
 0x37b   :  { %v834_v27 = vpop.f32.mrf.mxu1  ;;  %v774_v12 = vpop.f32.mrf.mxu0 }
 0x380   :  { %v754_v2 = vpop.f32.mrf.mxu3  ;;  %v734_v3 = vpop.f32.mrf.mxu2 }
 0x381   :  { %v755_v4 = vadd.f32 %v754_v2, %v734_v3 }
 0x383   :  { %v854_v28 = vpop.f32.mrf.mxu0 }
 0x388   :  { %v814_v5 = vpop.f32.mrf.mxu3 }
 0x389   :  { %v815_v8 = vadd.f32 %v814_v5, %v755_v4  ;;  %v794_v13 = vpop.f32.mrf.mxu2 }
 0x38a   :  { %v795_v23 = vadd.f32 %v794_v13, %v774_v12 }
 0x38b   :  { %v835_v9 = vadd.f32 %v834_v27, %v815_v8 }
 0x38c   :  { %v855_v30 = vadd.f32 %v854_v28, %v795_v23 }
 0x38d   :  { %v989_v10 = vmul.f32 -1.442695, %v835_v9 }
 0x38f   :  { %1037 = vpow2.f32 %v989_v10 }
 0x395   :  { %v1038_v11 = vpop.eup %1037 }
 0x396   :  { %v883_v20 = vadd.f32 1.0, %v1038_v11 }
 0x398   :  { %1039 = vrcp.f32 %v883_v20  ;;  %v896_v14 = vand.u32 2147483648, %v883_v20  ;;  %v894_v38 = vand.u32 2147483647, %v883_v20  ;;  %vm890_vm7 = vweird.f32 %v883_v20 }
 0x39a   :  { %v897_v40 = vor.u32 1.1754944e-38, %v896_v14  ;;  %vm895_vm9 = vcmp.eq.f32.partialorder %v894_v38, 8.507059e+37 }
 0x39e   :  { %v1040_v25 = vpop.eup %1039 }
 0x39f   :  { %v886_v29 = vmul.f32 %v1040_v25, %v883_v20  ;;  %vm891_vm6 = vweird.f32 %v1040_v25 }
 0x3a0   :  { %vm892_vm8 = vmor %vm890_vm7, %vm891_vm6 }
 0x3a1   :  { %v887_v19 = vsub.f32 1.0, %v886_v29  ;;  %v874_v36 = vpop.f32.mrf.mxu2 }
 0x3a2   :  { %v875_v15 = vadd.f32 %v874_v36, %v855_v30 }
 0x3a3   :  { %v888_v26 = vmul.f32 %v1040_v25, %v887_v19 }
 0x3a4   :  { %v990_v39 = vmul.f32 -1.442695, %v875_v15 }
 0x3a5   :  { %v889_v21 = vadd.f32 %v1040_v25, %v888_v26 }
 0x3a6   :  { %1041 = vpow2.f32 %v990_v39 }
 0x3a7   :  { %v893_v41 = vsel %vm892_vm8, %v1040_v25, %v889_v21 }
 0x3a8   :  { %v898_v42 = vsel %vm895_vm9, %v897_v40, %v893_v41 }
 0x3a9   :  { %v915_v57 = vperm.slane %v898_v42, 0  ;;  %v933_v43 = vperm.slane %v898_v42, 1 }
 0x3ab   :  { %v917_v17 = vmul.f32 %v915_v57, %v1321_v33  ;;  %v919_v44 = vmul.f32 %v915_v57, %v1324_v35  ;;  %v921_v45 = vmul.f32 %v915_v57, %v1311_v16  ;;  %v923_v47 = vmul.f32 %v915_v57, %v1315_v31 }
 0x3ac   :  { %v1042_v46 = vpop.eup %1041  ;;  %v935_v48 = vmul.f32 %v933_v43, %v1344_v59  ;;  %v937_v18 = vmul.f32 %v933_v43, %v1338_v52  ;;  %v939_v50 = vmul.f32 %v933_v43, %v1354_v24  ;;  %v941_v33 = vmul.f32 %v933_v43, %v1360_v34 }
 0x3ad   :  { %925 = vst [vmem:[#allocation8] sm:$0xff] %v917_v17  ;;  %v884_v49 = vadd.f32 1.0, %v1042_v46 }
 0x3ae   :  { %927 = vst [vmem:[#allocation8 + $0x10] sm:$0xff] %v919_v44 }
 0x3af   :  { %929 = vst [vmem:[#allocation8 + $0x20] sm:$0xff] %v921_v45  ;;  %1043 = vrcp.f32 %v884_v49  ;;  %v911_v51 = vand.u32 2147483648, %v884_v49  ;;  %v909_v53 = vand.u32 2147483647, %v884_v49  ;;  %vm905_vm11 = vweird.f32 %v884_v49 }
 0x3b0   :  { %931 = vst [vmem:[#allocation8 + $0x30] sm:$0xff] %v923_v47 }
 0x3b1   :  { %943 = vst [vmem:[#allocation8 + $0x40] sm:$0xff] %v935_v48  ;;  %v912_v52 = vor.u32 1.1754944e-38, %v911_v51  ;;  %vm910_vm13 = vcmp.eq.f32.partialorder %v909_v53, 8.507059e+37 }
 0x3b2   :  { %945 = vst [vmem:[#allocation8 + $0x50] sm:$0xff] %v937_v18 }
 0x3b3   :  { %947 = vst [vmem:[#allocation8 + $0x60] sm:$0xff] %v939_v50 }
 0x3b4   :  { %949 = vst [vmem:[#allocation8 + $0x70] sm:$0xff] %v941_v33 }
 0x3b5   :  { %v1044_v16 = vpop.eup %1043 }
 0x3b6   :  { %v901_v31 = vmul.f32 %v1044_v16, %v884_v49  ;;  %vm906_vm10 = vweird.f32 %v1044_v16 }
 0x3b7   :  { %vm907_vm12 = vmor %vm905_vm11, %vm906_vm10 }
 0x3b8   :  { %v902_v35 = vsub.f32 1.0, %v901_v31 }
 0x3ba   :  { %v903_v59 = vmul.f32 %v1044_v16, %v902_v35 }
 0x3bc   :  { %v904_v55 = vadd.f32 %v1044_v16, %v903_v59 }
 0x3be   :  { %v908_v24 = vsel %vm907_vm12, %v1044_v16, %v904_v55 }
 0x3bf   :  { %v913_v56 = vsel %vm910_vm13, %v912_v52, %v908_v24 }
 0x3c0   :  { %v916_v58 = vperm.slane %v913_v56, 0  ;;  %v934_v34 = vperm.slane %v913_v56, 1 }
 0x3c2   :  { %v918_v60 = vmul.f32 %v916_v58, %v1300_v0  ;;  %v920_v62 = vmul.f32 %v916_v58, %v1303_v6  ;;  %v922_v63 = vmul.f32 %v916_v58, %v1306_v7  ;;  %v924_v1 = vmul.f32 %v916_v58, %v1318_v32 }
 0x3c3   :  { %v936_v2 = vmul.f32 %v934_v34, %v1346_v61  ;;  %v938_v3 = vmul.f32 %v934_v34, %v1340_v54  ;;  %v940_v4 = vmul.f32 %v934_v34, %v1356_v22  ;;  %v942_v0 = vmul.f32 %v934_v34, %v1362_v37 }
 0x3c4   :  { %926 = vst [vmem:[#allocation8 + $0x8] sm:$0xff] %v918_v60 }
 0x3c5   :  { %928 = vst [vmem:[#allocation8 + $0x18] sm:$0xff] %v920_v62 }
 0x3c6   :  { %930 = vst [vmem:[#allocation8 + $0x28] sm:$0xff] %v922_v63 }
 0x3c7   :  { %932 = vst [vmem:[#allocation8 + $0x38] sm:$0xff] %v924_v1 }
 0x3c8   :  { %944 = vst [vmem:[#allocation8 + $0x48] sm:$0xff] %v936_v2 }
 0x3c9   :  { %946 = vst [vmem:[#allocation8 + $0x58] sm:$0xff] %v938_v3 }
 0x3ca   :  { %948 = vst [vmem:[#allocation8 + $0x68] sm:$0xff] %v940_v4 }
 0x3cb   :  { %950 = vst [vmem:[#allocation8 + $0x78] sm:$0xff] %v942_v0 }
 0x3cc   :  { %963 = dma.vmem_to_hbm [thread:$0]  %s956_s25, 2048, %s958_s30, [#allocation4], %s1156_s26, %s1156_s26, %s1157_s27  }
 0x3cd   :  { %1153 = dma.done.wait [#allocation4], 2048  }
 0x3ce   :  { %1154 = vsyncadd [#allocation4], 4294965248 }
 0x3cf   :  { %968 = vsyncpa [#allocation3], 1 }
 0x3d0   :  { %969 = vsyncpa [#allocation6], 1 }
 0x3d1   :  { %970 = vsyncpa [#allocation4], 1 }

</bundles_post_ra>
